<compile_context>
chip_gen: v7x
topology: tpu7x:2x2x1
jax: 0.10.0
libtpu: 0.0.40
codegen_flags: <defaults>
</compile_context>

<pallas_src>
import functools

import jax
import jax.numpy as jnp
from jax.experimental import pallas as pl
from jax.experimental.pallas import tpu as pltpu


def _round_up(x, m):
    return ((x + m - 1) // m) * m


def _pad2(a, rows, cols):
    r, c = a.shape
    return jnp.pad(a, ((0, rows - r), (0, cols - c)))


def _actor_kernel(x_ref, w1_ref, b1_ref, w2_ref, b2_ref, w3_ref, b3_ref,
                  wh_ref, bh_ref, out_ref, *, n_out):
    # x_ref: (TB, I_pad)   w1: (I_pad, H_pad)   w2/w3: (H_pad, H_pad)
    # wh: (H_pad, O2_pad)  -> fused [mean | log_std | zero-pad] head.
    x = x_ref[...]

    h = jnp.dot(x, w1_ref[...], preferred_element_type=jnp.float32) + b1_ref[...]
    h = jnp.maximum(h, 0.0)

    h = jnp.dot(h, w2_ref[...], preferred_element_type=jnp.float32) + b2_ref[...]
    h = jnp.maximum(h, 0.0)

    h = jnp.dot(h, w3_ref[...], preferred_element_type=jnp.float32) + b3_ref[...]
    h = jnp.maximum(h, 0.0)

    # Single fused head matmul (mean and log_std share the RHS).
    y = jnp.dot(h, wh_ref[...], preferred_element_type=jnp.float32) + bh_ref[...]

    # Columns [0, n_out) are mean (unclamped); columns [n_out, 2*n_out) are
    # log_std and get the clamp.  Padded columns are zeros either way.
    col = jax.lax.broadcasted_iota(jnp.int32, y.shape, 1)
    y = jnp.where(col >= n_out, jnp.clip(y, -20.0, 2.0), y)

    out_ref[...] = y.astype(out_ref.dtype)


def prepare_actor_params(params):
    """One-time preparation: fuse the two heads and pad everything to MXU/lane
    alignment.  Call once; reuse the result for every forward."""
    n_in, H = params["w1"].shape
    n_out = params["w4"].shape[1]

    I_pad = _round_up(n_in, 128)
    H_pad = _round_up(H, 128)
    O2_pad = _round_up(2 * n_out, 128)

    w_head = jnp.concatenate([params["w4"], params["w5"]], axis=1)   # (H, 2*n_out)
    b_head = jnp.concatenate([params["b4"], params["b5"]], axis=1)   # (1, 2*n_out)

    return dict(
        n_in=n_in, n_out=n_out, I_pad=I_pad, H_pad=H_pad, O2_pad=O2_pad,
        w1=_pad2(params["w1"], I_pad, H_pad), b1=_pad2(params["b1"], 1, H_pad),
        w2=_pad2(params["w2"], H_pad, H_pad), b2=_pad2(params["b2"], 1, H_pad),
        w3=_pad2(params["w3"], H_pad, H_pad), b3=_pad2(params["b3"], 1, H_pad),
        wh=_pad2(w_head, H_pad, O2_pad),      bh=_pad2(b_head, 1, O2_pad),
    )


def actor_forward(x, prepared, *, batch_tile=256):
    """Pallas forward of ActorNet. Returns (mean, log_std), each (B, n_output)."""
    B = x.shape[0]
    n_in, n_out = prepared["n_in"], prepared["n_out"]
    I_pad, H_pad, O2_pad = prepared["I_pad"], prepared["H_pad"], prepared["O2_pad"]
    assert x.shape[1] == n_in

    # Small batches: shrink the tile to round_up(B, 8) instead of padding up.
    tile = _round_up(min(batch_tile, _round_up(B, 8)), 8)
    B_pad = _round_up(B, tile)

    x_p = jnp.pad(x.astype(jnp.float32), ((0, B_pad - B), (0, I_pad - n_in)))

    grid = (B_pad // tile,)

    def const_spec(shape):
        # Full block, constant index -> DMA'd once, resident across grid steps.
        return pl.BlockSpec(shape, lambda i: (0, 0))

    in_specs = [
        pl.BlockSpec((tile, I_pad), lambda i: (i, 0)),        # x tile (lane-dense)
        const_spec(prepared["w1"].shape), const_spec(prepared["b1"].shape),
        const_spec(prepared["w2"].shape), const_spec(prepared["b2"].shape),
        const_spec(prepared["w3"].shape), const_spec(prepared["b3"].shape),
        const_spec(prepared["wh"].shape), const_spec(prepared["bh"].shape),
    ]
    out_specs = pl.BlockSpec((tile, O2_pad), lambda i: (i, 0))  # fused, lane-dense
    out_shape = jax.ShapeDtypeStruct((B_pad, O2_pad), jnp.float32)

    weight_bytes = 4 * sum(prepared[k].size
                           for k in ("w1", "b1", "w2", "b2", "w3", "b3", "wh", "bh"))
    flops = 2 * B_pad * (I_pad * H_pad + 2 * H_pad * H_pad + H_pad * O2_pad)
    bytes_accessed = 4 * (x_p.size + B_pad * O2_pad) + weight_bytes

    fused = pl.pallas_call(
        functools.partial(_actor_kernel, n_out=n_out),
        out_shape=out_shape,
        grid_spec=pltpu.PrefetchScalarGridSpec(
            num_scalar_prefetch=0,
            grid=grid,
            in_specs=in_specs,
            out_specs=out_specs,
        ),
        compiler_params=pltpu.CompilerParams(
            dimension_semantics=("parallel",)),
        cost_estimate=pl.CostEstimate(
            flops=flops, transcendentals=0, bytes_accessed=bytes_accessed),
    )(x_p, prepared["w1"], prepared["b1"], prepared["w2"], prepared["b2"],
      prepared["w3"], prepared["b3"], prepared["wh"], prepared["bh"])

    # Split fused head and strip batch / lane padding.
    mean = fused[:B, :n_out]
    log_std = fused[:B, n_out:2 * n_out]
    return mean, log_std


def init_actor_params(key, n_input, n_output, n_hidden=256):
    """Deterministic init matching nn.Linear's default U(-1/sqrt(fan_in), +)."""
    dims = [(n_input, n_hidden),    # fc1
            (n_hidden, n_hidden),   # fc2
            (n_hidden, n_hidden),   # fc3
            (n_hidden, n_output),   # fc4 (mean head)
            (n_hidden, n_output)]   # fc5 (log_std head)
    params = {}
    for idx, (fan_in, fan_out) in enumerate(dims, start=1):
        key, kw, kb = jax.random.split(key, 3)
        bound = 1.0 / jnp.sqrt(jnp.float32(fan_in))
        params[f"w{idx}"] = jax.random.uniform(
            kw, (fan_in, fan_out), jnp.float32, -bound, bound)
        params[f"b{idx}"] = jax.random.uniform(
            kb, (1, fan_out), jnp.float32, -bound, bound)
    return params


def actor_ref(x, params):
    """Pure-JAX reference for correctness checking."""
    h = jax.nn.relu(x @ params["w1"] + params["b1"])
    h = jax.nn.relu(h @ params["w2"] + params["b2"])
    h = jax.nn.relu(h @ params["w3"] + params["b3"])
    mean = h @ params["w4"] + params["b4"]
    log_std = jnp.clip(h @ params["w5"] + params["b5"], -20.0, 2.0)
    return mean, log_std


if __name__ == "__main__":
    # Small shapes consistent with ActorNet(n_input, n_output, n_hidden)
    B, N_INPUT, N_OUTPUT, HIDDEN = 8, 16, 6, 32

    key = jax.random.PRNGKey(0)
    key, kx, kp = jax.random.split(key, 3)
    x = jax.random.normal(kx, (B, N_INPUT), jnp.float32)
    params = init_actor_params(kp, N_INPUT, N_OUTPUT, HIDDEN)

    prepared = prepare_actor_params(params)   # one-time pad/fuse of weights

    mean, log_std = actor_forward(x, prepared)
    mean = jax.block_until_ready(mean)
    log_std = jax.block_until_ready(log_std)

    mean_ref, log_std_ref = actor_ref(x, params)
    assert mean.shape == (B, N_OUTPUT) and log_std.shape == (B, N_OUTPUT)
    assert jnp.allclose(mean, mean_ref, atol=1e-4, rtol=1e-4), "mean mismatch"
    assert jnp.allclose(log_std, log_std_ref, atol=1e-4, rtol=1e-4), "log_std mismatch"

    print("KERNEL_OK")
</pallas_src>

<mosaic_0001>
module attributes {stable_mosaic.version = 11 : i64} {
  func.func @_actor_kernel(%arg0: i32, %arg1: memref<8x128xf32, #tpu.memory_space<vmem>>, %arg2: memref<128x128xf32, #tpu.memory_space<vmem>>, %arg3: memref<1x128xf32, #tpu.memory_space<vmem>>, %arg4: memref<128x128xf32, #tpu.memory_space<vmem>>, %arg5: memref<1x128xf32, #tpu.memory_space<vmem>>, %arg6: memref<128x128xf32, #tpu.memory_space<vmem>>, %arg7: memref<1x128xf32, #tpu.memory_space<vmem>>, %arg8: memref<128x128xf32, #tpu.memory_space<vmem>>, %arg9: memref<1x128xf32, #tpu.memory_space<vmem>>, %arg10: memref<8x128xf32, #tpu.memory_space<vmem>>) attributes {dimension_semantics = [#tpu.dimension_semantics<parallel>], iteration_bounds = array<i64: 1>, scalar_prefetch = 0 : i64, scratch_operands = 0 : i64, tpu.core_type = #tpu.core_type<tc>, window_params = [{transform_indices = @transform_0, window_bounds = array<i64: 8, 128>}, {pipeline_mode = #tpu.pipeline_mode<synchronous>, transform_indices = @transform_1, window_bounds = array<i64: 128, 128>}, {pipeline_mode = #tpu.pipeline_mode<synchronous>, transform_indices = @transform_2, window_bounds = array<i64: 1, 128>}, {pipeline_mode = #tpu.pipeline_mode<synchronous>, transform_indices = @transform_3, window_bounds = array<i64: 128, 128>}, {pipeline_mode = #tpu.pipeline_mode<synchronous>, transform_indices = @transform_4, window_bounds = array<i64: 1, 128>}, {pipeline_mode = #tpu.pipeline_mode<synchronous>, transform_indices = @transform_5, window_bounds = array<i64: 128, 128>}, {pipeline_mode = #tpu.pipeline_mode<synchronous>, transform_indices = @transform_6, window_bounds = array<i64: 1, 128>}, {pipeline_mode = #tpu.pipeline_mode<synchronous>, transform_indices = @transform_7, window_bounds = array<i64: 128, 128>}, {pipeline_mode = #tpu.pipeline_mode<synchronous>, transform_indices = @transform_8, window_bounds = array<i64: 1, 128>}, {transform_indices = @transform_9, window_bounds = array<i64: 8, 128>}]} {
    %c0 = arith.constant 0 : index
    %c0_0 = arith.constant 0 : index
    %0 = vector.load %arg1[%c0, %c0_0] : memref<8x128xf32, #tpu.memory_space<vmem>>, vector<8x128xf32>
    %c0_1 = arith.constant 0 : index
    %c0_2 = arith.constant 0 : index
    %1 = vector.load %arg2[%c0_1, %c0_2] : memref<128x128xf32, #tpu.memory_space<vmem>>, vector<128x128xf32>
    %cst = arith.constant dense<0.000000e+00> : vector<8x128xf32>
    %2 = tpu.matmul %0, %1, %cst {dimension_numbers = #tpu.dot_dimension_numbers<[1], [0], [0], [1], [0, 0, 1, 1], [], []>} : vector<8x128xf32>, vector<128x128xf32>, vector<8x128xf32> -> vector<8x128xf32>
    %c0_3 = arith.constant 0 : index
    %c0_4 = arith.constant 0 : index
    %3 = vector.load %arg3[%c0_3, %c0_4] : memref<1x128xf32, #tpu.memory_space<vmem>>, vector<1x128xf32>
    %4 = vector.broadcast %3 : vector<1x128xf32> to vector<8x128xf32>
    %5 = arith.addf %2, %4 : vector<8x128xf32>
    %cst_5 = arith.constant 0.000000e+00 : f32
    %6 = vector.broadcast %cst_5 : f32 to vector<8x128xf32>
    %7 = arith.maximumf %5, %6 : vector<8x128xf32>
    %c0_6 = arith.constant 0 : index
    %c0_7 = arith.constant 0 : index
    %8 = vector.load %arg4[%c0_6, %c0_7] : memref<128x128xf32, #tpu.memory_space<vmem>>, vector<128x128xf32>
    %cst_8 = arith.constant dense<0.000000e+00> : vector<8x128xf32>
    %9 = tpu.matmul %7, %8, %cst_8 {dimension_numbers = #tpu.dot_dimension_numbers<[1], [0], [0], [1], [0, 0, 1, 1], [], []>} : vector<8x128xf32>, vector<128x128xf32>, vector<8x128xf32> -> vector<8x128xf32>
    %c0_9 = arith.constant 0 : index
    %c0_10 = arith.constant 0 : index
    %10 = vector.load %arg5[%c0_9, %c0_10] : memref<1x128xf32, #tpu.memory_space<vmem>>, vector<1x128xf32>
    %11 = vector.broadcast %10 : vector<1x128xf32> to vector<8x128xf32>
    %12 = arith.addf %9, %11 : vector<8x128xf32>
    %cst_11 = arith.constant 0.000000e+00 : f32
    %13 = vector.broadcast %cst_11 : f32 to vector<8x128xf32>
    %14 = arith.maximumf %12, %13 : vector<8x128xf32>
    %c0_12 = arith.constant 0 : index
    %c0_13 = arith.constant 0 : index
    %15 = vector.load %arg6[%c0_12, %c0_13] : memref<128x128xf32, #tpu.memory_space<vmem>>, vector<128x128xf32>
    %cst_14 = arith.constant dense<0.000000e+00> : vector<8x128xf32>
    %16 = tpu.matmul %14, %15, %cst_14 {dimension_numbers = #tpu.dot_dimension_numbers<[1], [0], [0], [1], [0, 0, 1, 1], [], []>} : vector<8x128xf32>, vector<128x128xf32>, vector<8x128xf32> -> vector<8x128xf32>
    %c0_15 = arith.constant 0 : index
    %c0_16 = arith.constant 0 : index
    %17 = vector.load %arg7[%c0_15, %c0_16] : memref<1x128xf32, #tpu.memory_space<vmem>>, vector<1x128xf32>
    %18 = vector.broadcast %17 : vector<1x128xf32> to vector<8x128xf32>
    %19 = arith.addf %16, %18 : vector<8x128xf32>
    %cst_17 = arith.constant 0.000000e+00 : f32
    %20 = vector.broadcast %cst_17 : f32 to vector<8x128xf32>
    %21 = arith.maximumf %19, %20 : vector<8x128xf32>
    %c0_18 = arith.constant 0 : index
    %c0_19 = arith.constant 0 : index
    %22 = vector.load %arg8[%c0_18, %c0_19] : memref<128x128xf32, #tpu.memory_space<vmem>>, vector<128x128xf32>
    %cst_20 = arith.constant dense<0.000000e+00> : vector<8x128xf32>
    %23 = tpu.matmul %21, %22, %cst_20 {dimension_numbers = #tpu.dot_dimension_numbers<[1], [0], [0], [1], [0, 0, 1, 1], [], []>} : vector<8x128xf32>, vector<128x128xf32>, vector<8x128xf32> -> vector<8x128xf32>
    %c0_21 = arith.constant 0 : index
    %c0_22 = arith.constant 0 : index
    %24 = vector.load %arg9[%c0_21, %c0_22] : memref<1x128xf32, #tpu.memory_space<vmem>>, vector<1x128xf32>
    %25 = vector.broadcast %24 : vector<1x128xf32> to vector<8x128xf32>
    %26 = arith.addf %23, %25 : vector<8x128xf32>
    %27 = tpu.iota {dimensions = array<i32: 1>} : vector<8x128xi32>
    %c6_i32 = arith.constant 6 : i32
    %28 = vector.broadcast %c6_i32 : i32 to vector<8x128xi32>
    %29 = arith.cmpi sge, %27, %28 : vector<8x128xi32>
    %cst_23 = arith.constant -2.000000e+01 : f32
    %cst_24 = arith.constant 2.000000e+00 : f32
    %30 = vector.broadcast %cst_23 : f32 to vector<8x128xf32>
    %31 = arith.maximumf %30, %26 : vector<8x128xf32>
    %32 = vector.broadcast %cst_24 : f32 to vector<8x128xf32>
    %33 = arith.minimumf %32, %31 : vector<8x128xf32>
    %34 = arith.select %29, %33, %26 : vector<8x128xi1>, vector<8x128xf32>
    %c0_25 = arith.constant 0 : index
    %c0_26 = arith.constant 0 : index
    %35 = vector.load %arg10[%c0_25, %c0_26] : memref<8x128xf32, #tpu.memory_space<vmem>>, vector<8x128xf32>
    tpu.vector_store %arg10[%c0_25, %c0_26], %34 {strides = array<i32>} : memref<8x128xf32, #tpu.memory_space<vmem>>, vector<8x128xf32>,
    return
  }
  func.func @transform_0(%arg0: i32) -> (i32, i32) {
    %c0_i32 = arith.constant 0 : i32
    %c0_i32_0 = arith.constant 0 : i32
    return %arg0, %c0_i32 : i32, i32
  }
  func.func @transform_1(%arg0: i32) -> (i32, i32) {
    %c0_i32 = arith.constant 0 : i32
    %c0_i32_0 = arith.constant 0 : i32
    %c0_i32_1 = arith.constant 0 : i32
    return %c0_i32, %c0_i32_0 : i32, i32
  }
  func.func @transform_2(%arg0: i32) -> (i32, i32) {
    %c0_i32 = arith.constant 0 : i32
    %c0_i32_0 = arith.constant 0 : i32
    %c0_i32_1 = arith.constant 0 : i32
    return %c0_i32, %c0_i32_0 : i32, i32
  }
  func.func @transform_3(%arg0: i32) -> (i32, i32) {
    %c0_i32 = arith.constant 0 : i32
    %c0_i32_0 = arith.constant 0 : i32
    %c0_i32_1 = arith.constant 0 : i32
    return %c0_i32, %c0_i32_0 : i32, i32
  }
  func.func @transform_4(%arg0: i32) -> (i32, i32) {
    %c0_i32 = arith.constant 0 : i32
    %c0_i32_0 = arith.constant 0 : i32
    %c0_i32_1 = arith.constant 0 : i32
    return %c0_i32, %c0_i32_0 : i32, i32
  }
  func.func @transform_5(%arg0: i32) -> (i32, i32) {
    %c0_i32 = arith.constant 0 : i32
    %c0_i32_0 = arith.constant 0 : i32
    %c0_i32_1 = arith.constant 0 : i32
    return %c0_i32, %c0_i32_0 : i32, i32
  }
  func.func @transform_6(%arg0: i32) -> (i32, i32) {
    %c0_i32 = arith.constant 0 : i32
    %c0_i32_0 = arith.constant 0 : i32
    %c0_i32_1 = arith.constant 0 : i32
    return %c0_i32, %c0_i32_0 : i32, i32
  }
  func.func @transform_7(%arg0: i32) -> (i32, i32) {
    %c0_i32 = arith.constant 0 : i32
    %c0_i32_0 = arith.constant 0 : i32
    %c0_i32_1 = arith.constant 0 : i32
    return %c0_i32, %c0_i32_0 : i32, i32
  }
  func.func @transform_8(%arg0: i32) -> (i32, i32) {
    %c0_i32 = arith.constant 0 : i32
    %c0_i32_0 = arith.constant 0 : i32
    %c0_i32_1 = arith.constant 0 : i32
    return %c0_i32, %c0_i32_0 : i32, i32
  }
  func.func @transform_9(%arg0: i32) -> (i32, i32) {
    %c0_i32 = arith.constant 0 : i32
    %c0_i32_0 = arith.constant 0 : i32
    return %arg0, %c0_i32 : i32, i32
  }
}

</mosaic_0001>

<bundles_post_ra>
// kernel: tpu_custom_call.1
= control target key start
LH: loop header
LB: loop body
LE: loop exit
PB: predicated region body
PF: predicated region fallthrough
CT: control target
= control target key end

     0   :  { %14 = vsyncpa [#allocation3], 0  ;;  %s1155_s0 = inlined_call_operand.hbm [shape: f32[8,128], index: 0, kind: input, shape index: {}]   ;;  %s1156_s1 = inlined_call_operand.hbm [shape: f32[128,128], index: 1, kind: input, shape index: {}]   ;;  %s1157_s2 = inlined_call_operand.vmem [shape: f32[1,128], index: 2, kind: input, shape index: {}]   ;;  %s1158_s3 = inlined_call_operand.hbm [shape: f32[128,128], index: 3, kind: input, shape index: {}]   ;;  %s1159_s4 = inlined_call_operand.vmem [shape: f32[1,128], index: 4, kind: input, shape index: {}]   ;;  %s1160_s5 = inlined_call_operand.hbm [shape: f32[128,128], index: 5, kind: input, shape index: {}]   ;;  %s1161_s6 = inlined_call_operand.vmem [shape: f32[1,128], index: 6, kind: input, shape index: {}]   ;;  %s1162_s7 = inlined_call_operand.hbm [shape: f32[128,128], index: 7, kind: input, shape index: {}]   ;;  %s1163_s8 = inlined_call_operand.vmem [shape: f32[1,128], index: 8, kind: input, shape index: {}]   ;;  %s1164_s9 = inlined_call_operand.hbm [shape: f32[8,128], index: 9, kind: output, shape index: {}]  }
   0x1   :  { %15 = vsyncpa [#allocation6], 0 }
   0x2   :  { %16 = vsyncpa [#allocation9], 0 }
   0x3   :  { %17 = vsyncpa [#allocation4], 0  ;;  %s958_s30 = smov [#allocation5]   ;;  %s818_s13 = scalar_lea.hbm %s1156_s1, 2048 }
   0x4   :  { %s33_s10 = sshll.u32 %s958_s30, 4  ;;  %p819_p0 = scmp.ne.s32.totalorder %s1156_s1, %s818_s13  ;;  %s34_s10 = int_to_ptr.vmem [resolvable:$true] %s33_s10 }
   0x5   :  { %p822_p1 = scmp.lt.u32.totalorder %s818_s13, %s1156_s1 }
   0x7   :  { %p824_p2 = pnand %p822_p1, %p819_p0 }
   0x9   :  { %827 = shalt.err (!%p824_p2)
}
   0xa   :  { %s828_s18 = scalar_lea.vmem %s34_s10, 2048  ;;  %p833_p4 = scmp.lt.s32.totalorder %s34_s10, %s34_s10 }
   0xb   :  { %p829_p3 = scmp.ne.s32.totalorder %s34_s10, %s828_s18  ;;  %p834_p5 = scmp.lt.s32.totalorder %s828_s18, %s828_s18 }
   0xd   :  { %p835_p6 = por %p834_p5, %p833_p4 }
   0xf   :  { %p836_p7 = pnand %p835_p6, %p829_p3 }
  0x11   :  { %839 = shalt.err (!%p836_p7)
}
  0x12   :  { %s959_s19 = smov 128   ;;  %s960_s20 = smov 8  }
  0x13   :  { %39 = dma.hbm_to_vmem [thread:$0]  %s1156_s1, 2048, %s34_s10, [#allocation6], %s959_s19, %s959_s19, %s960_s20  }
  0x14   :  { %s961_s23 = smov [#allocation8]   ;;  %s962_s25 = smov [#allocation2]  }
  0x15   :  { %s61_s24 = sshll.u32 %s961_s23, 4  ;;  %s24_s26 = sshll.u32 %s962_s25, 4  ;;  %s62_s24 = int_to_ptr.vmem [resolvable:$true] %s61_s24  ;;  %s25_s26 = int_to_ptr.vmem [resolvable:$true] %s24_s26 }
  0x16   :  { %s840_s29 = scalar_lea.hbm %s1160_s5, 2048 }
  0x17   :  { %p841_p8 = scmp.ne.s32.totalorder %s1160_s5, %s840_s29  ;;  %p844_p9 = scmp.lt.u32.totalorder %s840_s29, %s1160_s5 }
  0x19   :  { %p846_p10 = pnand %p844_p9, %p841_p8 }
  0x1b   :  { %849 = shalt.err (!%p846_p10)
}
  0x1c   :  { %s850_s1 = scalar_lea.vmem %s62_s24, 2048  ;;  %p855_p12 = scmp.lt.s32.totalorder %s62_s24, %s62_s24 }
  0x1d   :  { %p851_p11 = scmp.ne.s32.totalorder %s62_s24, %s850_s1  ;;  %p856_p13 = scmp.lt.s32.totalorder %s850_s1, %s850_s1 }
  0x1f   :  { %p857_p0 = por %p856_p13, %p855_p12 }
  0x21   :  { %p858_p1 = pnand %p857_p0, %p851_p11 }
  0x23   :  { %861 = shalt.err (!%p858_p1)
}
  0x24   :  { %67 = dma.hbm_to_vmem [thread:$0]  %s1160_s5, 2048, %s62_s24, [#allocation9], %s959_s19, %s959_s19, %s960_s20  }
  0x25   :  { %s862_s17 = scalar_lea.hbm %s1155_s0, 128 }
  0x26   :  { %p863_p2 = scmp.ne.s32.totalorder %s1155_s0, %s862_s17  ;;  %p866_p3 = scmp.lt.u32.totalorder %s862_s17, %s1155_s0 }
  0x28   :  { %p868_p4 = pnand %p866_p3, %p863_p2 }
  0x2a   :  { %871 = shalt.err (!%p868_p4)
}
  0x2b   :  { %s872_s25 = scalar_lea.vmem %s25_s26, 128  ;;  %p877_p6 = scmp.lt.s32.totalorder %s25_s26, %s25_s26 }
  0x2c   :  { %p873_p5 = scmp.ne.s32.totalorder %s25_s26, %s872_s25  ;;  %p878_p7 = scmp.lt.s32.totalorder %s872_s25, %s872_s25 }
  0x2e   :  { %p879_p8 = por %p878_p7, %p877_p6 }
  0x30   :  { %p880_p9 = pnand %p879_p8, %p873_p5 }
  0x32   :  { %883 = shalt.err (!%p880_p9)
}
  0x33   :  { %27 = dma.hbm_to_vmem [thread:$0]  %s1155_s0, 128, %s25_s26, [#allocation3]  }
  0x34   :  { %s963_s27 = smov [#allocation7]   ;;  %s964_s29 = smov [#allocation10]  }
  0x35   :  { %s47_s28 = sshll.u32 %s963_s27, 4  ;;  %s75_s30 = sshll.u32 %s964_s29, 4  ;;  %s48_s28 = int_to_ptr.vmem [resolvable:$true] %s47_s28  ;;  %s76_s30 = int_to_ptr.vmem [resolvable:$true] %s75_s30 }
  0x36   :  { %s884_s13 = scalar_lea.hbm %s1158_s3, 2048 }
  0x37   :  { %p885_p10 = scmp.ne.s32.totalorder %s1158_s3, %s884_s13  ;;  %p888_p11 = scmp.lt.u32.totalorder %s884_s13, %s1158_s3 }
  0x39   :  { %p890_p12 = pnand %p888_p11, %p885_p10 }
  0x3b   :  { %893 = shalt.err (!%p890_p12)
}
  0x3c   :  { %s894_s0 = scalar_lea.vmem %s48_s28, 2048  ;;  %p899_p0 = scmp.lt.s32.totalorder %s48_s28, %s48_s28 }
  0x3d   :  { %p895_p13 = scmp.ne.s32.totalorder %s48_s28, %s894_s0  ;;  %p900_p1 = scmp.lt.s32.totalorder %s894_s0, %s894_s0 }
  0x3f   :  { %p901_p2 = por %p900_p1, %p899_p0 }
  0x41   :  { %p902_p3 = pnand %p901_p2, %p895_p13 }
  0x43   :  { %905 = shalt.err (!%p902_p3)
}
  0x44   :  { %53 = dma.hbm_to_vmem [thread:$0]  %s1158_s3, 2048, %s48_s28, [#allocation6], %s959_s19, %s959_s19, %s960_s20  }
  0x45   :  { %s906_s21 = scalar_lea.hbm %s1162_s7, 2048 }
  0x46   :  { %p907_p4 = scmp.ne.s32.totalorder %s1162_s7, %s906_s21  ;;  %p910_p5 = scmp.lt.u32.totalorder %s906_s21, %s1162_s7 }
  0x48   :  { %p912_p6 = pnand %p910_p5, %p907_p4 }
  0x4a   :  { %915 = shalt.err (!%p912_p6)
}
  0x4b   :  { %s916_s24 = scalar_lea.vmem %s76_s30, 2048  ;;  %p921_p8 = scmp.lt.s32.totalorder %s76_s30, %s76_s30 }
  0x4c   :  { %p917_p7 = scmp.ne.s32.totalorder %s76_s30, %s916_s24  ;;  %p922_p9 = scmp.lt.s32.totalorder %s916_s24, %s916_s24 }
  0x4e   :  { %p923_p10 = por %p922_p9, %p921_p8 }
  0x50   :  { %p924_p11 = pnand %p923_p10, %p917_p7 }
  0x52   :  { %927 = shalt.err (!%p924_p11)
}
  0x53   :  { %81 = dma.hbm_to_vmem [thread:$0]  %s1162_s7, 2048, %s76_s30, [#allocation9], %s959_s19, %s959_s19, %s960_s20  }
  0x54   :  { %950 = dma.done.wait [#allocation3], 128  }
  0x55   :  { %951 = vsyncadd [#allocation3], 4294967168 }
  0x56   :  { %952 = dma.done.wait [#allocation6], 4096  }
  0x57   :  { %953 = vsyncadd [#allocation6], 4294963200 }
  0x58   :  { %954 = dma.done.wait [#allocation9], 4096  }
  0x59   :  { %955 = vsyncadd [#allocation9], 4294963200  ;;  %v965_v0 = vmov 0.0|0.0   ;;  %vm966_vm0 = vmmov 0   ;;  %v967_v1 = vmov 0.0   ;;  %v100_v2 = vld [vmem:[#allocation5] sm:$0xff] }
  0x5a   :  { %711 = vmatprep.subr.bf16.mxu0 %v965_v0  ;;  %603 = vmatprep.mubr.msk.f32.mxu0 %vm966_vm0, %v967_v1  ;;  %v101_v3 = vld [vmem:[#allocation5 + $0x8] sm:$0xff]  ;;  %v102_v4 = vld [vmem:[#allocation5 + $0x10] sm:$0xff]  ;;  %v103_v6 = vld [vmem:[#allocation5 + $0x18] sm:$0xff]  ;;  %s968_s11 = smov [#allocation11]  }
  0x5b   :  { %735 = vmatprep.subr.bf16.mxu1 %v965_v0  ;;  %638 = vmatprep.mubr.msk.f32.mxu1 %vm966_vm0, %v967_v1  ;;  %v712_v5 = vpack.c.bf16 %v101_v3, %v100_v2  ;;  %v715_v7 = vpack.c.bf16 %v103_v6, %v102_v4  ;;  %v104_v8 = vld [vmem:[#allocation5 + $0x20] sm:$0xff]  ;;  %v105_v9 = vld [vmem:[#allocation5 + $0x28] sm:$0xff]  ;;  %v196_v12 = vld [vmem:[#allocation7 + $0x10] sm:$0xff]  ;;  %s488_s12 = sshll.u32 %s968_s11, 4  ;;  %s489_s12 = int_to_ptr.vmem [resolvable:$true] %s488_s12 }
  0x5c   :  { %v194_v10 = vld [vmem:[#allocation7] sm:$0xff]  ;;  %v195_v11 = vld [vmem:[#allocation7 + $0x8] sm:$0xff]  ;;  %v197_v13 = vld [vmem:[#allocation7 + $0x18] sm:$0xff]  ;;  %v718_v14 = vpack.c.bf16 %v105_v9, %v104_v8  ;;  %p933_p13 = scmp.lt.s32.totalorder %s489_s12, %s489_s12 }
  0x5d   :  { %713 = vmatpush3.bf16.msra.mxu0 %v712_v5  ;;  %v736_v15 = vpack.c.bf16 %v195_v11, %v194_v10  ;;  %v106_v16 = vld [vmem:[#allocation5 + $0x30] sm:$0xff]  ;;  %v107_v17 = vld [vmem:[#allocation5 + $0x38] sm:$0xff]  ;;  %v739_v18 = vpack.c.bf16 %v197_v13, %v196_v12  ;;  %v198_v19 = vld [vmem:[#allocation7 + $0x20] sm:$0xff] }
  0x5e   :  { %714 = vmatprep.subr.bf16.mxu0 %v965_v0  ;;  %v199_v20 = vld [vmem:[#allocation7 + $0x28] sm:$0xff]  ;;  %v721_v21 = vpack.c.bf16 %v107_v17, %v106_v16  ;;  %v108_v22 = vld [vmem:[#allocation5 + $0x40] sm:$0xff]  ;;  %v200_v25 = vld [vmem:[#allocation7 + $0x30] sm:$0xff] }
  0x5f   :  { %737 = vmatpush3.bf16.msra.mxu1 %v736_v15  ;;  %v109_v23 = vld [vmem:[#allocation5 + $0x48] sm:$0xff]  ;;  %v742_v24 = vpack.c.bf16 %v199_v20, %v198_v19  ;;  %v201_v26 = vld [vmem:[#allocation7 + $0x38] sm:$0xff]  ;;  %v110_v28 = vld [vmem:[#allocation5 + $0x50] sm:$0xff] }
  0x60   :  { %738 = vmatprep.subr.bf16.mxu1 %v965_v0  ;;  %v724_v27 = vpack.c.bf16 %v109_v23, %v108_v22  ;;  %v111_v29 = vld [vmem:[#allocation5 + $0x58] sm:$0xff]  ;;  %v745_v30 = vpack.c.bf16 %v201_v26, %v200_v25  ;;  %v202_v31 = vld [vmem:[#allocation7 + $0x40] sm:$0xff]  ;;  %v203_v32 = vld [vmem:[#allocation7 + $0x48] sm:$0xff] }
  0x61   :  { %716 = vmatpush3.bf16.msra.mxu0 %v715_v7  ;;  %v727_v33 = vpack.c.bf16 %v111_v29, %v110_v28  ;;  %v112_v34 = vld [vmem:[#allocation5 + $0x60] sm:$0xff]  ;;  %v113_v35 = vld [vmem:[#allocation5 + $0x68] sm:$0xff]  ;;  %v748_v36 = vpack.c.bf16 %v203_v32, %v202_v31  ;;  %v204_v37 = vld [vmem:[#allocation7 + $0x50] sm:$0xff] }
  0x62   :  { %717 = vmatprep.subr.bf16.mxu0 %v965_v0  ;;  %v205_v38 = vld [vmem:[#allocation7 + $0x58] sm:$0xff]  ;;  %v730_v39 = vpack.c.bf16 %v113_v35, %v112_v34  ;;  %v114_v40 = vld [vmem:[#allocation5 + $0x70] sm:$0xff]  ;;  %v206_v43 = vld [vmem:[#allocation7 + $0x60] sm:$0xff] }
  0x63   :  { %740 = vmatpush3.bf16.msra.mxu1 %v739_v18  ;;  %v115_v41 = vld [vmem:[#allocation5 + $0x78] sm:$0xff]  ;;  %v751_v42 = vpack.c.bf16 %v205_v38, %v204_v37  ;;  %v207_v44 = vld [vmem:[#allocation7 + $0x68] sm:$0xff]  ;;  %v208_v48 = vld [vmem:[#allocation7 + $0x70] sm:$0xff] }
  0x64   :  { %741 = vmatprep.subr.bf16.mxu1 %v965_v0  ;;  %v733_v45 = vpack.c.bf16 %v115_v41, %v114_v40  ;;  %v754_v46 = vpack.c.bf16 %v207_v44, %v206_v43  ;;  %v99_v47 = vld [vmem:[#allocation2] sm:$0xff]  ;;  %v288_v51 = vld [vmem:[#allocation8] sm:$0xff]  ;;  %v289_v52 = vld [vmem:[#allocation8 + $0x8] sm:$0xff] }
  0x65   :  { %719 = vmatpush3.bf16.msra.mxu0 %v718_v14  ;;  %v209_v49 = vld [vmem:[#allocation7 + $0x78] sm:$0xff]  ;;  %v290_v53 = vld [vmem:[#allocation8 + $0x10] sm:$0xff]  ;;  %v760_v54 = vpack.c.bf16 %v289_v52, %v288_v51  ;;  %v292_v57 = vld [vmem:[#allocation8 + $0x20] sm:$0xff] }
  0x66   :  { %720 = vmatprep.subr.bf16.mxu0 %v965_v0  ;;  %v757_v50 = vpack.c.bf16 %v209_v49, %v208_v48  ;;  %v291_v55 = vld [vmem:[#allocation8 + $0x18] sm:$0xff]  ;;  %v293_v58 = vld [vmem:[#allocation8 + $0x28] sm:$0xff]  ;;  %v294_v60 = vld [vmem:[#allocation8 + $0x30] sm:$0xff] }
  0x67   :  { %743 = vmatpush3.bf16.msra.mxu1 %v742_v24  ;;  %v763_v56 = vpack.c.bf16 %v291_v55, %v290_v53  ;;  %v766_v59 = vpack.c.bf16 %v293_v58, %v292_v57  ;;  %v295_v61 = vld [vmem:[#allocation8 + $0x38] sm:$0xff]  ;;  %v296_v63 = vld [vmem:[#allocation8 + $0x40] sm:$0xff]  ;;  %v297_v2 = vld [vmem:[#allocation8 + $0x48] sm:$0xff] }
  0x68   :  { %744 = vmatprep.subr.bf16.mxu1 %v965_v0  ;;  %v769_v62 = vpack.c.bf16 %v295_v61, %v294_v60  ;;  %v772_v3 = vpack.c.bf16 %v297_v2, %v296_v63  ;;  %v298_v4 = vld [vmem:[#allocation8 + $0x50] sm:$0xff]  ;;  %v299_v5 = vld [vmem:[#allocation8 + $0x58] sm:$0xff]  ;;  %v300_v7 = vld [vmem:[#allocation8 + $0x60] sm:$0xff] }
  0x69   :  { %722 = vmatpush3.bf16.msra.mxu0 %v721_v21  ;;  %v775_v6 = vpack.c.bf16 %v299_v5, %v298_v4  ;;  %v301_v8 = vld [vmem:[#allocation8 + $0x68] sm:$0xff]  ;;  %v499_v10 = vld [vmem:[%s1157_s2] ss:$0 sm:$0xff]  ;;  %v302_v15 = vld [vmem:[#allocation8 + $0x70] sm:$0xff] }
  0x6a   :  { %723 = vmatprep.subr.bf16.mxu0 %v965_v0  ;;  %v778_v9 = vpack.c.bf16 %v301_v8, %v300_v7  ;;  %v303_v16 = vld [vmem:[#allocation8 + $0x78] sm:$0xff]  ;;  %v382_v18 = vld [vmem:[#allocation10] sm:$0xff]  ;;  %v383_v19 = vld [vmem:[#allocation10 + $0x8] sm:$0xff] }
  0x6b   :  { %746 = vmatpush3.bf16.msra.mxu1 %v745_v30  ;;  %v781_v17 = vpack.c.bf16 %v303_v16, %v302_v15  ;;  %v384_v20 = vld [vmem:[#allocation10 + $0x10] sm:$0xff]  ;;  %v784_v21 = vpack.c.bf16 %v383_v19, %v382_v18  ;;  %v385_v22 = vld [vmem:[#allocation10 + $0x18] sm:$0xff]  ;;  %v386_v24 = vld [vmem:[#allocation10 + $0x20] sm:$0xff] }
  0x6c   :  { %747 = vmatprep.subr.bf16.mxu1 %v965_v0  ;;  %v787_v23 = vpack.c.bf16 %v385_v22, %v384_v20  ;;  %v387_v25 = vld [vmem:[#allocation10 + $0x28] sm:$0xff]  ;;  %v390_v29 = vld [vmem:[#allocation10 + $0x40] sm:$0xff]  ;;  %v392_v32 = vld [vmem:[#allocation10 + $0x50] sm:$0xff] }
  0x6d   :  { %725 = vmatpush3.bf16.msra.mxu0 %v724_v27  ;;  %v790_v26 = vpack.c.bf16 %v387_v25, %v386_v24  ;;  %v389_v27 = vld [vmem:[#allocation10 + $0x38] sm:$0xff]  ;;  %v391_v30 = vld [vmem:[#allocation10 + $0x48] sm:$0xff]  ;;  %v394_v35 = vld [vmem:[#allocation10 + $0x60] sm:$0xff] }
  0x6e   :  { %726 = vmatprep.subr.bf16.mxu0 %v965_v0  ;;  %v796_v31 = vpack.c.bf16 %v391_v30, %v390_v29  ;;  %v500_v38 = vld [vmem:[%s1159_s4] ss:$0 sm:$0xff]  ;;  %v396_v43 = vld [vmem:[#allocation10 + $0x70] sm:$0xff] }
  0x6f   :  { %749 = vmatpush3.bf16.msra.mxu1 %v748_v36  ;;  %v395_v36 = vld [vmem:[#allocation10 + $0x68] sm:$0xff]  ;;  %v397_v44 = vld [vmem:[#allocation10 + $0x78] sm:$0xff] }
  0x70   :  { %750 = vmatprep.subr.bf16.mxu1 %v965_v0  ;;  %v802_v37 = vpack.c.bf16 %v395_v36, %v394_v35  ;;  %v502_v51 = vld [vmem:[%s1163_s8] ss:$0 sm:$0xff] }
  0x71   :  { %728 = vmatpush3.bf16.msra.mxu0 %v727_v33  ;;  %v393_v33 = vld [vmem:[#allocation10 + $0x58] sm:$0xff] }
  0x72   :  { %729 = vmatprep.subr.bf16.mxu0 %v965_v0  ;;  %v799_v34 = vpack.c.bf16 %v393_v33, %v392_v32 }
  0x73   :  { %752 = vmatpush3.bf16.msra.mxu1 %v751_v42 }
  0x74   :  { %753 = vmatprep.subr.bf16.mxu1 %v965_v0 }
  0x75   :  { %731 = vmatpush3.bf16.msra.mxu0 %v730_v39 }
  0x76   :  { %732 = vmatprep.subr.bf16.mxu0 %v965_v0 }
  0x77   :  { %755 = vmatpush3.bf16.msra.mxu1 %v754_v46  ;;  %v501_v46 = vld [vmem:[%s1161_s6] ss:$0 sm:$0xff]  ;;  %s928_s6 = scalar_lea.vmem %s489_s12, 128 }
  0x78   :  { %756 = vmatprep.subr.bf16.mxu1 %v965_v0  ;;  %p929_p12 = scmp.ne.s32.totalorder %s489_s12, %s928_s6  ;;  %p934_p0 = scmp.lt.s32.totalorder %s928_s6, %s928_s6 }
  0x79   :  { %734 = vmatpush3.bf16.msra.mxu0 %v733_v45  ;;  %v805_v45 = vpack.c.bf16 %v397_v44, %v396_v43 }
  0x7a   :  { %759 = vmatprep.subr.bf16.mxu0 %v965_v0  ;;  %p935_p1 = por %p934_p0, %p933_p13 }
  0x7b   :  { %758 = vmatpush3.bf16.msra.mxu1 %v757_v50  ;;  %v475_v50 = vlaneseq }
  0x7c   :  { %604 = vmatmul.mubr.f32.vlgmr.msra.gmra.mrb[0].mxu0 %v99_v47  ;;  %783 = vmatprep.subr.bf16.mxu1 %v965_v0  ;;  %p936_p2 = pnand %p935_p1, %p929_p12 }
  0x7d   :  { %673 = vmatprep.mubr.msk.f32.mxu0 %vm966_vm0, %v967_v1  ;;  %761 = vmatpush3.bf16.msra.mxu0 %v760_v54  ;;  %v476_v53 = vand.u32 127, %v475_v50 }
  0x7e   :  { %762 = vmatprep.subr.bf16.mxu0 %v965_v0 }
  0x7f   :  { %vm477_vm1 = vcmp.ge.s32.totalorder %v476_v53, 6 }
  0x81   :  { %764 = vmatpush3.bf16.msra.mxu0 %v763_v56 }
  0x82   :  { %765 = vmatprep.subr.bf16.mxu0 %v965_v0 }
  0x85   :  { %767 = vmatpush3.bf16.msra.mxu0 %v766_v59 }
  0x86   :  { %768 = vmatprep.subr.bf16.mxu0 %v965_v0 }
  0x89   :  { %770 = vmatpush3.bf16.msra.mxu0 %v769_v62 }
  0x8a   :  { %771 = vmatprep.subr.bf16.mxu0 %v965_v0 }
  0x8d   :  { %773 = vmatpush3.bf16.msra.mxu0 %v772_v3 }
  0x8e   :  { %774 = vmatprep.subr.bf16.mxu0 %v965_v0 }
  0x91   :  { %776 = vmatpush3.bf16.msra.mxu0 %v775_v6 }
  0x92   :  { %777 = vmatprep.subr.bf16.mxu0 %v965_v0 }
  0x95   :  { %779 = vmatpush3.bf16.msra.mxu0 %v778_v9 }
  0x96   :  { %780 = vmatprep.subr.bf16.mxu0 %v965_v0 }
  0x99   :  { %782 = vmatpush3.bf16.msra.mxu0 %v781_v17 }
 0x14f   :  { %v189_v11 = vpop.f32.mrb[0].mxu0 }
 0x150   :  { %v190_v12 = vadd.f32 %v499_v10, %v189_v11  ;;  %v605_v13 = vpop.f32.mrb[1].mxu0 }
 0x152   :  { %v193_v14 = vmax.f32 %v190_v12, 0.0 }
 0x154   :  { %639 = vmatmul.mubr.f32.vlgmr.msra.gmra.mrb[0].mxu1 %v193_v14 }
 0x155   :  { %708 = vmatprep.mubr.msk.f32.mxu1 %vm966_vm0, %v967_v1  ;;  %785 = vmatpush3.bf16.msra.mxu1 %v784_v21  ;;  %v388_v1 = vld [vmem:[#allocation10 + $0x30] sm:$0xff] }
 0x156   :  { %786 = vmatprep.subr.bf16.mxu1 %v965_v0  ;;  %v793_v28 = vpack.c.bf16 %v389_v27, %v388_v1 }
 0x159   :  { %788 = vmatpush3.bf16.msra.mxu1 %v787_v23 }
 0x15a   :  { %789 = vmatprep.subr.bf16.mxu1 %v965_v0 }
 0x15d   :  { %791 = vmatpush3.bf16.msra.mxu1 %v790_v26 }
 0x15e   :  { %792 = vmatprep.subr.bf16.mxu1 %v965_v0 }
 0x161   :  { %794 = vmatpush3.bf16.msra.mxu1 %v793_v28 }
 0x162   :  { %795 = vmatprep.subr.bf16.mxu1 %v965_v0 }
 0x165   :  { %797 = vmatpush3.bf16.msra.mxu1 %v796_v31 }
 0x166   :  { %798 = vmatprep.subr.bf16.mxu1 %v965_v0 }
 0x169   :  { %800 = vmatpush3.bf16.msra.mxu1 %v799_v34 }
 0x16a   :  { %801 = vmatprep.subr.bf16.mxu1 %v965_v0 }
 0x16d   :  { %803 = vmatpush3.bf16.msra.mxu1 %v802_v37 }
 0x16e   :  { %804 = vmatprep.subr.bf16.mxu1 %v965_v0 }
 0x171   :  { %806 = vmatpush3.bf16.msra.mxu1 %v805_v45 }
 0x227   :  { %v283_v39 = vpop.f32.mrb[0].mxu1 }
 0x228   :  { %v284_v40 = vadd.f32 %v500_v38, %v283_v39  ;;  %v640_v41 = vpop.f32.mrb[1].mxu1 }
 0x22a   :  { %v287_v42 = vmax.f32 %v284_v40, 0.0 }
 0x22c   :  { %674 = vmatmul.mubr.f32.vlgmr.msra.gmra.mrb[2].mxu0 %v287_v42 }
 0x2ff   :  { %v377_v47 = vpop.f32.mrb[2].mxu0 }
 0x300   :  { %v378_v48 = vadd.f32 %v501_v46, %v377_v47  ;;  %v675_v0 = vpop.f32.mrb[3].mxu0 }
 0x302   :  { %v381_v49 = vmax.f32 %v378_v48, 0.0 }
 0x304   :  { %709 = vmatmul.mubr.f32.vlgmr.msra.gmra.mrb[2].mxu1 %v381_v49 }
 0x3d7   :  { %v471_v52 = vpop.f32.mrb[2].mxu1 }
 0x3d8   :  { %v472_v54 = vadd.f32 %v502_v51, %v471_v52  ;;  %v710_v55 = vpop.f32.mrb[3].mxu1 }
 0x3da   :  { %v478_v56 = vmax.f32 %v472_v54, -20.0 }
 0x3dc   :  { %v479_v57 = vmin.f32 %v478_v56, 2.0 }
 0x3de   :  { %v480_v58 = vsel %vm477_vm1, %v479_v57, %v472_v54 }
 0x3df   :  { %481 = vst [vmem:[#allocation11] sm:$0xff] %v480_v58 }
 0x3e0   :  { %939 = shalt.err (!%p936_p2)
}
 0x3e1   :  { %s940_s1 = scalar_lea.hbm %s1164_s9, 128 }
 0x3e2   :  { %p941_p3 = scmp.ne.s32.totalorder %s1164_s9, %s940_s1  ;;  %p944_p4 = scmp.lt.u32.totalorder %s940_s1, %s1164_s9 }
 0x3e4   :  { %p946_p5 = pnand %p944_p4, %p941_p3 }
 0x3e6   :  { %949 = shalt.err (!%p946_p5)
}
 0x3e7   :  { %491 = dma.vmem_to_hbm [thread:$0]  %s489_s12, 128, %s1164_s9, [#allocation4]  }
 0x3e8   :  { %956 = dma.done.wait [#allocation4], 128  }
 0x3e9   :  { %957 = vsyncadd [#allocation4], 4294967168 }
 0x3ea   :  { %495 = vsyncpa [#allocation3], 1 }
 0x3eb   :  { %496 = vsyncpa [#allocation6], 1 }
 0x3ec   :  { %497 = vsyncpa [#allocation9], 1 }
 0x3ed   :  { %498 = vsyncpa [#allocation4], 1 }

</bundles_post_ra>
